<compile_context>
chip_gen: v6e
topology: v6e:2x2x1
jax: 0.10.0
libtpu: 0.0.40
codegen_flags: <defaults>
</compile_context>

<pallas_src>
import functools

import jax
import jax.numpy as jnp
from jax.experimental import pallas as pl
from jax.experimental.pallas import tpu as pltpu


CONFIG = dict(
    words_dim=32,
    embed_mode="random",
    output_channel=16,
    filter_width=3,
    vocab_size=100,
    dropout=0.1,  # nn.Dropout is never called in forward -> intentionally omitted
)


def _round_up(x, m):
    return (x + m - 1) // m * m


def _conv_emb_kernel(tok_ref, tab_ref, w_ref, b_ref, o_ref, *, fw, t_out, tb):
    # tok_ref: (TB*S_pad, 1) int32 token ids, time-padded with a zero-row pad id
    # tab_ref: (V_pad, D)     compute-dtype embedding table (zero rows appended)
    # w_ref  : (FW, D, OC_pad) compute-dtype conv weight, channels zero-padded
    # b_ref  : (1, OC_pad)    f32 conv bias (zero-padded channels)
    # o_ref  : (TB, OC_pad)   f32 pooled output slab (lane-dense store)
    v_pad, d = tab_ref.shape
    oc_pad = w_ref.shape[2]
    s_pad = tok_ref.shape[0] // tb
    cdt = tab_ref.dtype

    # --- fused embedding gather: single flat one-hot matmul on the MXU --------
    tok = tok_ref[...]                                            # (TB*S_pad, 1)
    vid = jax.lax.broadcasted_iota(jnp.int32, (tb * s_pad, v_pad), 1)
    onehot = jnp.where(tok == vid, 1.0, 0.0).astype(cdt)         # (TB*S_pad, V_pad)
    # exactly one nonzero per row -> result is exactly the (cdt) table row;
    # pad-id rows select an all-zero row == the conv's zero time padding.
    x_flat = jnp.dot(onehot, tab_ref[...],
                     preferred_element_type=jnp.float32).astype(cdt)
    x_pad = x_flat.reshape(tb, s_pad, d)                          # (TB, S_pad, D)

    # --- conv as FW flattened 2-D matmuls, f32 accumulation --------------------
    acc = jnp.zeros((tb * t_out, oc_pad), jnp.float32)
    for k in range(fw):                                           # static unroll
        lhs = x_pad[:, k:k + t_out, :].reshape(tb * t_out, d)     # (TB*T_out, D)
        acc = acc + jnp.dot(lhs, w_ref[k],
                            preferred_element_type=jnp.float32)

    # --- global max-pool over time BEFORE tanh (monotone -> identical result),
    #     then bias + tanh on the pooled (TB, OC_pad) slab only; lane-dense store
    pooled = jnp.max(acc.reshape(tb, t_out, oc_pad), axis=1)      # (TB, OC_pad)
    o_ref[...] = jnp.tanh(pooled + b_ref[...])


def convolutional_embedding(tokens, embed_table, conv_w, conv_b, config, *,
                            batch_tile=64, compute_dtype=jnp.bfloat16):
    """tokens (B,S) int32 -> (B, OC) float32, matching the PyTorch module."""
    fw = config["filter_width"]
    oc = config["output_channel"]
    d = config["words_dim"]
    vocab = config["vocab_size"]
    B, S = tokens.shape

    pad = fw - 1
    s_pad = S + 2 * pad
    t_out = s_pad - fw + 1                                        # == S + fw - 1

    oc_pad = _round_up(oc, 128)                                   # lane-dense channels
    v_pad = _round_up(vocab + 1, 128)                             # >= vocab+1 zero rows
    pad_id = vocab                                                # maps to a zero row

    # Batch tile: multiple of 8, as large as B allows (amortizes per-step
    # overhead, tall MXU M dim), but keep the grid >= 2 steps when possible so
    # "parallel" can shard the batch axis across v7x's two TensorCores.
    b_ceil8 = _round_up(max(B, 1), 8)
    tb = min(_round_up(batch_tile, 8), b_ceil8)
    if b_ceil8 >= 16 and b_ceil8 // tb < 2:
        tb = _round_up(b_ceil8 // 2, 8)
    b_pad = _round_up(B, tb)

    # --- cheap wrapper-side glue (ints / weights only, no (B,S,D) activations) -
    toks = jnp.full((b_pad, s_pad), pad_id, dtype=jnp.int32)
    toks = toks.at[:B, pad:pad + S].set(tokens.astype(jnp.int32))
    toks = toks.reshape(b_pad * s_pad, 1)                         # flat token ids

    table_p = jnp.zeros((v_pad, d), compute_dtype)
    table_p = table_p.at[:vocab].set(embed_table.astype(compute_dtype))

    w = jnp.transpose(conv_w[:, 0, :, :], (1, 2, 0)).astype(compute_dtype)  # (FW,D,OC)
    w_p = jnp.zeros((fw, d, oc_pad), compute_dtype).at[:, :, :oc].set(w)
    b_p = jnp.zeros((1, oc_pad), jnp.float32).at[0, :oc].set(conv_b.astype(jnp.float32))

    kernel = functools.partial(_conv_emb_kernel, fw=fw, t_out=t_out, tb=tb)

    itemsize = jnp.dtype(compute_dtype).itemsize
    cost = pl.CostEstimate(
        flops=2 * b_pad * s_pad * v_pad * d + 2 * b_pad * fw * t_out * d * oc_pad,
        transcendentals=b_pad * oc_pad,                           # tanh after pooling
        bytes_accessed=(toks.size * 4 + table_p.size * itemsize
                        + w_p.size * itemsize + b_p.size * 4 + b_pad * oc_pad * 4),
    )

    out = pl.pallas_call(
        kernel,
        out_shape=jax.ShapeDtypeStruct((b_pad, oc_pad), jnp.float32),
        grid_spec=pltpu.PrefetchScalarGridSpec(
            num_scalar_prefetch=0,
            grid=(b_pad // tb,),                                  # TB rows per step
            in_specs=[
                pl.BlockSpec((tb * s_pad, 1), lambda b: (b, 0)),     # tokens (flat)
                pl.BlockSpec((v_pad, d), lambda b: (0, 0)),          # table (resident)
                pl.BlockSpec((fw, d, oc_pad), lambda b: (0, 0, 0)),  # weight (resident)
                pl.BlockSpec((1, oc_pad), lambda b: (0, 0)),         # bias (resident)
            ],
            out_specs=pl.BlockSpec((tb, oc_pad), lambda b: (b, 0)),
        ),
        compiler_params=pltpu.CompilerParams(
            dimension_semantics=("parallel",),                    # v7x megacore shard
        ),
        cost_estimate=cost,
    )(toks, table_p, w_p, b_p)

    return out[:B, :oc]                                           # (B, OC) float32


def _reference(tokens, embed_table, conv_w, conv_b, config,
               compute_dtype=jnp.bfloat16):
    """Pure-JAX reference mirroring the PyTorch forward (same bf16 casts)."""
    fw = config["filter_width"]
    x = embed_table.astype(compute_dtype)[tokens]                 # (B, S, D)
    pad = fw - 1
    x_pad = jnp.pad(x, ((0, 0), (pad, pad), (0, 0)))
    t_out = x_pad.shape[1] - fw + 1
    w = jnp.transpose(conv_w[:, 0, :, :], (1, 2, 0)).astype(compute_dtype)
    acc = jnp.zeros((x.shape[0], t_out, conv_w.shape[0]), jnp.float32)
    for k in range(fw):
        acc = acc + jnp.einsum("btd,do->bto", x_pad[:, k:k + t_out, :], w[k],
                               preferred_element_type=jnp.float32)
    y = jnp.tanh(acc + conv_b[None, None, :].astype(jnp.float32))  # tanh-then-max,
    return jnp.max(y, axis=1)                                      # as in PyTorch


if __name__ == "__main__":
    cfg = CONFIG
    B, S = 2, 8
    key = jax.random.PRNGKey(0)
    k_tok, k_emb, k_w, k_b = jax.random.split(key, 4)

    tokens = jax.random.randint(k_tok, (B, S), 0, cfg["vocab_size"], dtype=jnp.int32)
    embed_table = jax.random.normal(
        k_emb, (cfg["vocab_size"], cfg["words_dim"]), jnp.float32)
    conv_w = 0.1 * jax.random.normal(
        k_w, (cfg["output_channel"], 1, cfg["filter_width"], cfg["words_dim"]),
        jnp.float32)
    conv_b = 0.1 * jax.random.normal(k_b, (cfg["output_channel"],), jnp.float32)

    out = convolutional_embedding(tokens, embed_table, conv_w, conv_b, cfg)
    out = jax.block_until_ready(out)

    ref = _reference(tokens, embed_table, conv_w, conv_b, cfg)
    assert out.shape == (B, cfg["output_channel"])
    assert jnp.allclose(out, ref, atol=1e-3, rtol=1e-3), "mismatch vs reference"

    print("KERNEL_OK")
</pallas_src>

<mosaic_0001>
module attributes {stable_mosaic.version = 11 : i64} {
  func.func @_conv_emb_kernel(%arg0: i32, %arg1: memref<96x1xi32, #tpu.memory_space<vmem>>, %arg2: memref<128x32xbf16, #tpu.memory_space<vmem>>, %arg3: memref<3x32x128xbf16, #tpu.memory_space<vmem>>, %arg4: memref<1x128xf32, #tpu.memory_space<vmem>>, %arg5: memref<8x128xf32, #tpu.memory_space<vmem>>) attributes {dimension_semantics = [#tpu.dimension_semantics<parallel>], iteration_bounds = array<i64: 1>, scalar_prefetch = 0 : i64, scratch_operands = 0 : i64, tpu.core_type = #tpu.core_type<tc>, window_params = [{transform_indices = @transform_0, window_bounds = array<i64: 96, 1>}, {pipeline_mode = #tpu.pipeline_mode<synchronous>, transform_indices = @transform_1, window_bounds = array<i64: 128, 32>}, {pipeline_mode = #tpu.pipeline_mode<synchronous>, transform_indices = @transform_2, window_bounds = array<i64: 3, 32, 128>}, {pipeline_mode = #tpu.pipeline_mode<synchronous>, transform_indices = @transform_3, window_bounds = array<i64: 1, 128>}, {transform_indices = @transform_4, window_bounds = array<i64: 8, 128>}]} {
    %c0 = arith.constant 0 : index
    %c0_0 = arith.constant 0 : index
    %0 = vector.load %arg1[%c0, %c0_0] : memref<96x1xi32, #tpu.memory_space<vmem>>, vector<96x1xi32>
    %1 = tpu.iota {dimensions = array<i32: 1>} : vector<96x128xi32>
    %2 = vector.broadcast %0 : vector<96x1xi32> to vector<96x128xi32>
    %3 = arith.cmpi eq, %2, %1 : vector<96x128xi32>
    %cst = arith.constant 1.000000e+00 : f32
    %cst_1 = arith.constant 0.000000e+00 : f32
    %4 = vector.broadcast %cst : f32 to vector<96x128xf32>
    %5 = vector.broadcast %cst_1 : f32 to vector<96x128xf32>
    %6 = arith.select %3, %4, %5 : vector<96x128xi1>, vector<96x128xf32>
    %7 = arith.truncf %6 : vector<96x128xf32> to vector<96x128xbf16>
    %c0_2 = arith.constant 0 : index
    %c0_3 = arith.constant 0 : index
    %8 = vector.load %arg2[%c0_2, %c0_3] : memref<128x32xbf16, #tpu.memory_space<vmem>>, vector<128x32xbf16>
    %cst_4 = arith.constant dense<0.000000e+00> : vector<96x32xf32>
    %9 = tpu.matmul %7, %8, %cst_4 {dimension_numbers = #tpu.dot_dimension_numbers<[1], [0], [0], [1], [0, 0, 1, 1], [], []>} : vector<96x128xbf16>, vector<128x32xbf16>, vector<96x32xf32> -> vector<96x32xf32>
    %10 = arith.truncf %9 : vector<96x32xf32> to vector<96x32xbf16>
    %11 = vector.shape_cast %10 : vector<96x32xbf16> to vector<8x12x32xbf16>
    %cst_5 = arith.constant 0.000000e+00 : f32
    %12 = vector.broadcast %cst_5 : f32 to vector<80x128xf32>
    %13 = vector.extract_strided_slice %11 {offsets = [0, 0, 0], sizes = [8, 10, 32], strides = [1, 1, 1]} : vector<8x12x32xbf16> to vector<8x10x32xbf16>
    %14 = vector.shape_cast %13 : vector<8x10x32xbf16> to vector<80x32xbf16>
    %c0_6 = arith.constant 0 : index
    %c0_7 = arith.constant 0 : index
    %c0_8 = arith.constant 0 : index
    %15 = vector.load %arg3[%c0_6, %c0_7, %c0_8] : memref<3x32x128xbf16, #tpu.memory_space<vmem>>, vector<1x32x128xbf16>
    %16 = vector.shape_cast %15 : vector<1x32x128xbf16> to vector<32x128xbf16>
    %cst_9 = arith.constant dense<0.000000e+00> : vector<80x128xf32>
    %17 = tpu.matmul %14, %16, %cst_9 {dimension_numbers = #tpu.dot_dimension_numbers<[1], [0], [0], [1], [0, 0, 1, 1], [], []>} : vector<80x32xbf16>, vector<32x128xbf16>, vector<80x128xf32> -> vector<80x128xf32>
    %18 = arith.addf %12, %17 : vector<80x128xf32>
    %19 = vector.extract_strided_slice %11 {offsets = [0, 1, 0], sizes = [8, 10, 32], strides = [1, 1, 1]} : vector<8x12x32xbf16> to vector<8x10x32xbf16>
    %20 = vector.shape_cast %19 : vector<8x10x32xbf16> to vector<80x32xbf16>
    %c1 = arith.constant 1 : index
    %c0_10 = arith.constant 0 : index
    %c0_11 = arith.constant 0 : index
    %21 = vector.load %arg3[%c1, %c0_10, %c0_11] : memref<3x32x128xbf16, #tpu.memory_space<vmem>>, vector<1x32x128xbf16>
    %22 = vector.shape_cast %21 : vector<1x32x128xbf16> to vector<32x128xbf16>
    %cst_12 = arith.constant dense<0.000000e+00> : vector<80x128xf32>
    %23 = tpu.matmul %20, %22, %cst_12 {dimension_numbers = #tpu.dot_dimension_numbers<[1], [0], [0], [1], [0, 0, 1, 1], [], []>} : vector<80x32xbf16>, vector<32x128xbf16>, vector<80x128xf32> -> vector<80x128xf32>
    %24 = arith.addf %18, %23 : vector<80x128xf32>
    %25 = vector.extract_strided_slice %11 {offsets = [0, 2, 0], sizes = [8, 10, 32], strides = [1, 1, 1]} : vector<8x12x32xbf16> to vector<8x10x32xbf16>
    %26 = vector.shape_cast %25 : vector<8x10x32xbf16> to vector<80x32xbf16>
    %c2 = arith.constant 2 : index
    %c0_13 = arith.constant 0 : index
    %c0_14 = arith.constant 0 : index
    %27 = vector.load %arg3[%c2, %c0_13, %c0_14] : memref<3x32x128xbf16, #tpu.memory_space<vmem>>, vector<1x32x128xbf16>
    %28 = vector.shape_cast %27 : vector<1x32x128xbf16> to vector<32x128xbf16>
    %cst_15 = arith.constant dense<0.000000e+00> : vector<80x128xf32>
    %29 = tpu.matmul %26, %28, %cst_15 {dimension_numbers = #tpu.dot_dimension_numbers<[1], [0], [0], [1], [0, 0, 1, 1], [], []>} : vector<80x32xbf16>, vector<32x128xbf16>, vector<80x128xf32> -> vector<80x128xf32>
    %30 = arith.addf %24, %29 : vector<80x128xf32>
    %31 = vector.shape_cast %30 : vector<80x128xf32> to vector<8x10x128xf32>
    %cst_16 = arith.constant dense<0xFF800000> : vector<8x128xf32>
    %32 = vector.multi_reduction <maximumf>, %31, %cst_16 [1] : vector<8x10x128xf32> to vector<8x128xf32>
    %c0_17 = arith.constant 0 : index
    %c0_18 = arith.constant 0 : index
    %33 = vector.load %arg4[%c0_17, %c0_18] : memref<1x128xf32, #tpu.memory_space<vmem>>, vector<1x128xf32>
    %34 = vector.broadcast %33 : vector<1x128xf32> to vector<8x128xf32>
    %35 = arith.addf %32, %34 : vector<8x128xf32>
    %36 = math.tanh %35 : vector<8x128xf32>
    %c0_19 = arith.constant 0 : index
    %c0_20 = arith.constant 0 : index
    %37 = vector.load %arg5[%c0_19, %c0_20] : memref<8x128xf32, #tpu.memory_space<vmem>>, vector<8x128xf32>
    tpu.vector_store %arg5[%c0_19, %c0_20], %36 {strides = array<i32>} : memref<8x128xf32, #tpu.memory_space<vmem>>, vector<8x128xf32>,
    return
  }
  func.func @transform_0(%arg0: i32) -> (i32, i32) {
    %c0_i32 = arith.constant 0 : i32
    %c0_i32_0 = arith.constant 0 : i32
    return %arg0, %c0_i32 : i32, i32
  }
  func.func @transform_1(%arg0: i32) -> (i32, i32) {
    %c0_i32 = arith.constant 0 : i32
    %c0_i32_0 = arith.constant 0 : i32
    %c0_i32_1 = arith.constant 0 : i32
    return %c0_i32, %c0_i32_0 : i32, i32
  }
  func.func @transform_2(%arg0: i32) -> (i32, i32, i32) {
    %c0_i32 = arith.constant 0 : i32
    %c0_i32_0 = arith.constant 0 : i32
    %c0_i32_1 = arith.constant 0 : i32
    %c0_i32_2 = arith.constant 0 : i32
    return %c0_i32, %c0_i32_0, %c0_i32_1 : i32, i32, i32
  }
  func.func @transform_3(%arg0: i32) -> (i32, i32) {
    %c0_i32 = arith.constant 0 : i32
    %c0_i32_0 = arith.constant 0 : i32
    %c0_i32_1 = arith.constant 0 : i32
    return %c0_i32, %c0_i32_0 : i32, i32
  }
  func.func @transform_4(%arg0: i32) -> (i32, i32) {
    %c0_i32 = arith.constant 0 : i32
    %c0_i32_0 = arith.constant 0 : i32
    return %arg0, %c0_i32 : i32, i32
  }
}

</mosaic_0001>

<bundles_post_ra>
// kernel: tpu_custom_call.1
= control target key start
LH: loop header
LB: loop body
LE: loop exit
PB: predicated region body
PF: predicated region fallthrough
CT: control target
= control target key end

     0   :  { %v2770_v2 = vmov 0   ;;  %s3643_s0 = inlined_call_operand.vmem [shape: s32[96,1], index: 0, kind: input, shape index: {}]   ;;  %s3644_s1 = inlined_call_operand.vmem [shape: bf16[128,32], index: 1, kind: input, shape index: {}]   ;;  %s3645_s2 = inlined_call_operand.vmem [shape: bf16[3,32,128], index: 2, kind: input, shape index: {}]   ;;  %s3646_s3 = inlined_call_operand.vmem [shape: f32[1,128], index: 3, kind: input, shape index: {}]   ;;  %s3647_s4 = inlined_call_operand.hbm [shape: f32[8,128], index: 4, kind: output, shape index: {}]  }
   0x1   :  { %v21_v0 = vld [vmem:[%s3643_s0 + $0x10] sm:$0xff]  ;;  %v19_v1 = vld [vmem:[%s3643_s0] sm:$0xff]  ;;  %2717 = vset.pattern.permute.xlu1 %v2770_v2  ;;  %2716 = vset.pattern.permute.xlu0 %v2770_v2  ;;  %v22_v3 = vld [vmem:[%s3643_s0 + $0x18] sm:$0xff] }
   0x2   :  { %40 = vperm.xlu1 %2717, %v21_v0   ;;  %34 = vperm.xlu0 %2716, %v19_v1   ;;  %v20_v4 = vld [vmem:[%s3643_s0 + $0x8] sm:$0xff]  ;;  %v2718_v5 = vld [vmem:[%s3644_s1 + $0x38] sm:$0xff]   ;;  %v2719_v6 = vld [vmem:[%s3644_s1 + $0x30] sm:$0xff]  }
   0x3   :  { %v24_v7 = vld [vmem:[%s3643_s0 + $0x28] sm:$0xff]  ;;  %v23_v8 = vld [vmem:[%s3643_s0 + $0x20] sm:$0xff]  ;;  %2609 = vmatprep.subr.bf16.mxu0 %v2718_v5  ;;  %v26_v10 = vld [vmem:[%s3643_s0 + $0x38] sm:$0xff] }
   0x4   :  { %2610 = vmatpush3.bf16.msra.mxu0 %v2718_v5  ;;  %v2720_v9 = vld [vmem:[%s3644_s1 + $0x28] sm:$0xff]   ;;  %v25_v11 = vld [vmem:[%s3643_s0 + $0x30] sm:$0xff]  ;;  %v2721_v12 = vld [vmem:[%s3644_s1 + $0x20] sm:$0xff]  }
   0x5   :  { %2611 = vmatprep.subr.bf16.mxu0 %v2719_v6  ;;  %v28_v13 = vld [vmem:[%s3643_s0 + $0x48] sm:$0xff]  ;;  %v27_v14 = vld [vmem:[%s3643_s0 + $0x40] sm:$0xff] }
   0x6   :  { %43 = vperm.xlu1 %2717, %v22_v3   ;;  %37 = vperm.xlu0 %2716, %v20_v4  }
   0x8   :  { %2612 = vmatpush3.bf16.msra.mxu0 %v2719_v6 }
   0x9   :  { %2613 = vmatprep.subr.bf16.mxu0 %v2720_v9 }
   0xa   :  { %49 = vperm.xlu1 %2717, %v24_v7   ;;  %46 = vperm.xlu0 %2716, %v23_v8  }
   0xc   :  { %2614 = vmatpush3.bf16.msra.mxu0 %v2720_v9 }
   0xe   :  { %55 = vperm.xlu1 %2717, %v26_v10   ;;  %52 = vperm.xlu0 %2716, %v25_v11  }
   0xf   :  { %9 = vsyncpa [#allocation3], 0  ;;  %2615 = vmatprep.subr.bf16.mxu0 %v2721_v12  ;;  %v2722_v15 = vld [vmem:[%s3644_s1 + $0x18] sm:$0xff]   ;;  %v29_v17 = vld [vmem:[%s3643_s0 + $0x50] sm:$0xff]  ;;  %v31_v21 = vlaneseq  ;;  %v2771_v27 = vmov 1.0|1.0  }
  0x10   :  { %v30_v16 = vld [vmem:[%s3643_s0 + $0x58] sm:$0xff]  ;;  %2616 = vmatpush3.bf16.msra.mxu0 %v2721_v12  ;;  %v2723_v18 = vld [vmem:[%s3644_s1 + $0x10] sm:$0xff]   ;;  %v2724_v19 = vld [vmem:[%s3644_s1 + $0x8] sm:$0xff]   ;;  %v3648_v36 = vmov 0.0   ;;  %v2774_v41 = vmov 1983009808  }
  0x11   :  { %2617 = vmatprep.subr.bf16.mxu0 %v2722_v15  ;;  %v2725_v20 = vld [vmem:[%s3644_s1] sm:$0xff]   ;;  %v32_v24 = vand.u32 127, %v31_v21  ;;  %v2726_v37 = vld [vmem:[%s3645_s2 + $0x28] sm:$0xff]   ;;  %2637 = vmatprep.subr.bf16.mxu1 %v3648_v36  ;;  %v2727_v38 = vld [vmem:[%s3645_s2 + $0x18] sm:$0xff]   ;;  %v258_v42 = vunpack.c.l.s4 %v2774_v41  ;;  %v2775_v43 = vmov 1966171168  }
  0x12   :  { %61 = vperm.xlu1 %2717, %v28_v13   ;;  %58 = vperm.xlu0 %2716, %v27_v14   ;;  %v2728_v39 = vld [vmem:[%s3645_s2 + $0x20] sm:$0xff]   ;;  %v2729_v40 = vld [vmem:[%s3645_s2 + $0x10] sm:$0xff]   ;;  %v359_v44 = vunpack.c.l.s4 %v2775_v43  ;;  %v261_v46 = vshrl.u32 %v31_v21, 7 }
  0x13   :  { %2638 = vmatpush3.bf16.msra.mxu1 %v2727_v38  ;;  %v259_v45 = vunpack.c.0.s8 %v258_v42 }
  0x14   :  { %2618 = vmatpush3.bf16.msra.mxu0 %v2722_v15  ;;  %2639 = vmatprep.subr.bf16.mxu1 %v3648_v36  ;;  %v360_v48 = vunpack.c.0.s8 %v359_v44 }
  0x15   :  { %2619 = vmatprep.subr.bf16.mxu0 %v2723_v18  ;;  %v2885_v50 = vsub.s32 %v259_v45, %v261_v46 }
  0x16   :  { %67 = vperm.xlu1 %2717, %v30_v16   ;;  %64 = vperm.xlu0 %2716, %v29_v17   ;;  %v2887_v52 = vsub.s32 %v360_v48, %v261_v46 }
  0x17   :  { %2640 = vmatpush3.bf16.msra.mxu1 %v2729_v40  ;;  %3654 = vst [vmem:[#allocation5_spill] sm:$0xff] %v2885_v50 }
  0x18   :  { %2620 = vmatpush3.bf16.msra.mxu0 %v2723_v18  ;;  %2661 = vmatprep.subr.bf16.mxu1 %v3648_v36 }
  0x19   :  { %2621 = vmatprep.subr.bf16.mxu0 %v2724_v19 }
  0x1c   :  { %2622 = vmatpush3.bf16.msra.mxu0 %v2724_v19 }
  0x1d   :  { %2623 = vmatprep.subr.bf16.mxu0 %v2725_v20 }
  0x20   :  { %2624 = vmatpush3.bf16.msra.mxu0 %v2725_v20 }
  0x21   :  { %2685 = vmatprep.subr.bf16.mxu0 %v3648_v36 }
  0x7d   :  { %v41_v22 = vpop.permute.xlu1 %40  ;;  %v35_v23 = vpop.permute.xlu0 %34 }
  0x7e   :  { %vm71_vm0 = vcmp.eq.s32.totalorder %v41_v22, %v32_v24  ;;  %vm69_vm3 = vcmp.eq.s32.totalorder %v35_v23, %v32_v24 }
  0x81   :  { %v44_v25 = vpop.permute.xlu1 %43  ;;  %v38_v26 = vpop.permute.xlu0 %37 }
  0x82   :  { %vm72_vm1 = vcmp.eq.s32.totalorder %v44_v25, %v32_v24  ;;  %vm70_vm2 = vcmp.eq.s32.totalorder %v38_v26, %v32_v24 }
  0x83   :  { %vm2484_vm4 = vmpackc.low %vm72_vm1, %vm71_vm0 }
  0x84   :  { %vm2482_vm5 = vmpackc.low %vm70_vm2, %vm69_vm3  ;;  %vm2773_vm2 = vmmov 0   ;;  %vm554_vm3 = vsmask.f32 256 }
  0x85   :  { %2625 = vmatprep.mubr.msk.bf16.mxu0 %vm2482_vm5, %v2771_v27  ;;  %v50_v28 = vpop.permute.xlu1 %49  ;;  %v47_v29 = vpop.permute.xlu0 %46  ;;  %2641 = vmatprep.mubr.msk.bf16.mxu1 %vm2773_vm2, %v3648_v36 }
  0x86   :  { %vm74_vm6 = vcmp.eq.s32.totalorder %v50_v28, %v32_v24  ;;  %2626 = vmatmul.mubr.msk.bf16.vlgmr.msra.gmra.mxu0 %vm2484_vm4, %v2771_v27  ;;  %vm73_vm7 = vcmp.eq.s32.totalorder %v47_v29, %v32_v24  ;;  %vm555_vm4 = vsmask.f32 1284 }
  0x87   :  { %vm2486_vm8 = vmpackc.low %vm74_vm6, %vm73_vm7  ;;  %2686 = vmatpush3.bf16.msra.mxu0 %v2726_v37  ;;  %vm557_vm6 = vsmask.f32 2312 }
  0x88   :  { %2629 = vmatprep.mubr.msk.bf16.mxu0 %vm2486_vm8, %v2771_v27  ;;  %2687 = vmatprep.subr.bf16.mxu0 %v3648_v36  ;;  %vm556_vm5 = vmor %vm554_vm3, %vm555_vm4  ;;  %vm559_vm8 = vsmask.f32 3340  ;;  %vm1159_vm3 = vcmask 261120   ;;  %vm2438_vm4 = vcmask 1041409  }
  0x89   :  { %v56_v30 = vpop.permute.xlu1 %55  ;;  %v53_v31 = vpop.permute.xlu0 %52  ;;  %vm558_vm7 = vmor %vm556_vm5, %vm557_vm6  ;;  %vm2441_vm5 = vcmask 1042434   ;;  %vm2444_vm6 = vcmask 1043459  }
  0x8a   :  { %vm76_vm9 = vcmp.eq.s32.totalorder %v56_v30, %v32_v24  ;;  %vm75_vm10 = vcmp.eq.s32.totalorder %v53_v31, %v32_v24 }
  0x8b   :  { %vm2488_vm11 = vmpackc.low %vm76_vm9, %vm75_vm10  ;;  %2688 = vmatpush3.bf16.msra.mxu0 %v2728_v39  ;;  %vm561_vm10 = vsmask.f32 4368 }
  0x8c   :  { %vm560_vm9 = vmor %vm558_vm7, %vm559_vm8  ;;  %vm2447_vm7 = vcmask 1044484   ;;  %vm2450_vm8 = vcmask 1045509  }
  0x8d   :  { %v62_v32 = vpop.permute.xlu1 %61  ;;  %v59_v33 = vpop.permute.xlu0 %58 }
  0x8e   :  { %vm78_vm12 = vcmp.eq.s32.totalorder %v62_v32, %v32_v24  ;;  %2630 = vmatmul.mubr.msk.bf16.gmra.mxu0 %vm2488_vm11, %v2771_v27  ;;  %vm77_vm13 = vcmp.eq.s32.totalorder %v59_v33, %v32_v24  ;;  %vm562_vm11 = vmor %vm560_vm9, %vm561_vm10  ;;  %vm2453_vm9 = vcmask 1046534   ;;  %vm2456_vm10 = vcmask 1047559  }
  0x8f   :  { %vm2490_vm14 = vmpackc.low %vm78_vm12, %vm77_vm13  ;;  %vm563_vm12 = vsmask.f32 5396 }
  0x90   :  { %2633 = vmatprep.mubr.msk.bf16.mxu0 %vm2490_vm14, %v2771_v27  ;;  %vm2891_vm13 = vmor %vm562_vm11, %vm563_vm12  ;;  %vm565_vm14 = vsmask.f32 6424 }
  0x91   :  { %v68_v34 = vpop.permute.xlu1 %67  ;;  %v65_v35 = vpop.permute.xlu0 %64 }
  0x92   :  { %vm80_vm15 = vcmp.eq.s32.totalorder %v68_v34, %v32_v24  ;;  %vm79_vm0 = vcmp.eq.s32.totalorder %v65_v35, %v32_v24 }
  0x93   :  { %vm2492_vm1 = vmpackc.low %vm80_vm15, %vm79_vm0  ;;  %vm567_vm15 = vsmask.f32 7452 }
  0x94   :  { %vm566_vm0 = vmor %vm2891_vm13, %vm565_vm14 }
  0x96   :  { %2634 = vmatmul.mubr.msk.bf16.gmra.mxu0 %vm2492_vm1, %v2771_v27  ;;  %vm2926_vm1 = vmor %vm566_vm0, %vm567_vm15 }
  0x97   :  { %2689 = vmatprep.mubr.msk.bf16.mxu0 %vm2773_vm2, %v3648_v36 }
 0x146   :  { %v2627_v47 = vpop.f32.mrf.mxu0 }
 0x148   :  { %v197_v49 = vpop.f32.mrf.mxu0 }
 0x14a   :  { %v2628_v51 = vpop.f32.mrf.mxu0 }
 0x14b   :  { %v245_v53 = vpack.c.bf16 %v2628_v51, %v2627_v47  ;;  %v2495_v54 = vpack.c.bf16 %v2628_v51, %v2628_v51 }
 0x14c   :  { %v200_v55 = vpop.f32.mrf.mxu0 }
 0x14d   :  { %v280_v56 = vrot.slane %v245_v53, %v2885_v50  ;;  %v287_v57 = vrot.slane %v2495_v54, %v2885_v50  ;;  %v244_v58 = vpack.c.bf16 %v200_v55, %v197_v49  ;;  %v2494_v59 = vpack.c.bf16 %v200_v55, %v200_v55 }
 0x14e   :  { %v2631_v61 = vpop.f32.mrf.mxu0 }
 0x14f   :  { %v288_v62 = vcombine.high %v280_v56, %v280_v56  ;;  %v289_v63 = vcombine.high %v287_v57, %v287_v57  ;;  %v2896_v0 = vrot.slane %v280_v56, %v2887_v52  ;;  %v2899_v1 = vrot.slane %v287_v57, %v2887_v52 }
 0x150   :  { %v263_v2 = vrot.slane %v244_v58, %v2885_v50  ;;  %v270_v3 = vrot.slane %v2494_v59, %v2885_v50  ;;  %v2903_v4 = vpop.f32.mrf.mxu0 }
 0x151   :  { %v2907_v5 = vcombine.high %v2896_v0, %v2896_v0  ;;  %v2910_v6 = vrot.slane %v288_v62, %v2887_v52  ;;  %v2914_v7 = vcombine.high %v2899_v1, %v2899_v1  ;;  %v2917_v8 = vrot.slane %v289_v63, %v2887_v52 }
 0x152   :  { %v271_v9 = vcombine.high %v263_v2, %v263_v2  ;;  %v2632_v11 = vpop.f32.mrf.mxu0  ;;  %v652_v16 = vshrl.u32 %v2899_v1, 16  ;;  %v272_v19 = vcombine.high %v270_v3, %v270_v3  ;;  %v364_v20 = vrot.slane %v263_v2, %v2887_v52 }
 0x153   :  { %v657_v10 = vshll.u32 %v2914_v7, 16  ;;  %v2924_v12 = vcombine.high %v2917_v8, %v2917_v8  ;;  %v1601_v18 = vcombine.low %v2896_v0, %v2907_v5  ;;  %v2961_v32 = vrot.slane %v270_v3, %v2887_v52 }
 0x154   :  { %v2941_v24 = vrot.slane %v271_v9, %v2887_v52  ;;  %v2948_v27 = vcombine.high %v364_v20, %v364_v20  ;;  %v2951_v28 = vrot.slane %v272_v19, %v2887_v52  ;;  %v216_v29 = vpop.f32.mrf.mxu0  ;;  %v247_v33 = vpack.c.bf16 %v2632_v11, %v2631_v61 }
 0x155   :  { %v2945_v25 = vsel %vm2926_vm1, %v652_v16, %v657_v10  ;;  %v2954_v30 = vrot.slane %v1601_v18, %v2887_v52  ;;  %v570_v35 = vshrl.u32 %v364_v20, 16  ;;  %v2497_v42 = vpack.c.bf16 %v2632_v11, %v2632_v11 }
 0x156   :  { %v2958_v31 = vcombine.high %v2941_v24, %v2941_v24  ;;  %v2965_v34 = vcombine.high %v2951_v28, %v2951_v28  ;;  %v575_v37 = vshll.u32 %v2948_v27, 16  ;;  %v583_v38 = vshll.u32 %v2941_v24, 16  ;;  %v2635_v47 = vpop.f32.mrf.mxu0 }
 0x157   :  { %v586_v39 = vshrl.u32 %v2941_v24, 16  ;;  %v1248_v40 = vcombine.low %v364_v20, %v2948_v27  ;;  %v578_v43 = vshrl.u32 %v2948_v27, 16  ;;  %v611_v44 = vshrl.u32 %v2951_v28, 16 }
 0x158   :  { %v1249_v41 = vcombine.low %v2941_v24, %v2958_v31  ;;  %v1250_v45 = vcombine.low %v2961_v32, %v2951_v28  ;;  %v1251_v46 = vcombine.low %v2965_v34, %v2896_v0  ;;  %v2981_v48 = vsel %vm2926_vm1, %v570_v35, %v575_v37  ;;  %v229_v9 = vpop.f32.mrf.mxu0 }
 0x159   :  { %v1258_v49 = vrot.slane %v1248_v40, %v2887_v52  ;;  %v1598_v53 = vcombine.low %v2948_v27, %v2941_v24  ;;  %v616_v54 = vshll.u32 %v2965_v34, 16  ;;  %v2562_v56 = vcombine.high %v2961_v32, %v2951_v28 }
 0x15a   :  { %v1265_v51 = vrot.slane %v1249_v41, %v2887_v52  ;;  %v2989_v55 = vrot.slane %v1251_v46, %v2887_v52  ;;  %v314_v57 = vrot.slane %v247_v33, %v2885_v50  ;;  %v321_v59 = vrot.slane %v2497_v42, %v2885_v50 }
 0x15b   :  { %v246_v60 = vpack.c.bf16 %v216_v29, %v2903_v4  ;;  %v2496_v61 = vpack.c.bf16 %v216_v29, %v216_v29  ;;  %v2997_v62 = vrot.slane %v1250_v45, %v2887_v52  ;;  %v1622_v63 = vrot.slane %v2562_v56, %v2887_v52 }
 0x15c   :  { %v1280_v58 = vcombine.low %v1258_v49, %v1265_v51  ;;  %v322_v2 = vcombine.high %v314_v57, %v314_v57  ;;  %v3001_v3 = vrot.slane %v314_v57, %v2887_v52  ;;  %v1599_v11 = vcombine.low %v2958_v31, %v2961_v32  ;;  %v2636_v49 = vpop.f32.mrf.mxu0 }
 0x15d   :  { %v323_v16 = vcombine.high %v321_v59, %v321_v59  ;;  %v297_v18 = vrot.slane %v246_v60, %v2885_v50  ;;  %v3010_v19 = vrot.slane %v1598_v53, %v2887_v52  ;;  %v304_v37 = vrot.slane %v2496_v61, %v2885_v50 }
 0x15e   :  { %3659 = vst [vmem:[#allocation6_spill] sm:$0xff] %v3001_v3  ;;  %v3014_v20 = vcombine.high %v3001_v3, %v3001_v3  ;;  %v3017_v29 = vrot.slane %v322_v2, %v2887_v52  ;;  %v3020_v33 = vrot.slane %v1280_v58, %v2887_v52  ;;  %v1631_v41 = vcombine.low %v1622_v63, %v2954_v30  ;;  %v232_v56 = vpop.f32.mrf.mxu0 }
 0x15f   :  { %v3023_v35 = vrot.slane %v323_v16, %v2887_v52  ;;  %v305_v40 = vcombine.high %v297_v18, %v297_v18  ;;  %v3028_v42 = vrot.slane %v321_v59, %v2887_v52  ;;  %v734_v45 = vshrl.u32 %v3001_v3, 16 }
 0x160   :  { %v739_v46 = vshll.u32 %v3014_v20, 16  ;;  %v3034_v51 = vcombine.high %v3017_v29, %v3017_v29  ;;  %v3042_v30 = vrot.slane %v297_v18, %v2887_v52  ;;  %v306_v58 = vcombine.high %v304_v37, %v304_v37 }
 0x161   :  { %v3038_v53 = vcombine.high %v3023_v35, %v3023_v35  ;;  %v3046_v59 = vrot.slane %v305_v40, %v2887_v52  ;;  %v3049_v60 = vrot.slane %v304_v37, %v2887_v52  ;;  %v249_v16 = vpack.c.bf16 %v2636_v49, %v2635_v47 }
 0x162   :  { %v3053_v61 = vsel %vm2926_vm1, %v734_v45, %v739_v46  ;;  %v3064_v37 = vrot.slane %v306_v58, %v2887_v52  ;;  %v2499_v2 = vpack.c.bf16 %v2636_v49, %v2636_v49  ;;  %v248_v22 = vpack.c.bf16 %v232_v56, %v229_v9 }
 0x163   :  { %v3061_v40 = vcombine.high %v3046_v59, %v3046_v59  ;;  %v3068_v45 = vcombine.high %v3049_v60, %v3049_v60  ;;  %v348_v47 = vrot.slane %v249_v16, %v2885_v50  ;;  %v2498_v16 = vpack.c.bf16 %v232_v56, %v232_v56 }
 0x164   :  { %v355_v26 = vrot.slane %v2499_v2, %v2885_v50  ;;  %v1615_v46 = vrot.slane %v1599_v11, %v2887_v52  ;;  %v331_v58 = vrot.slane %v248_v22, %v2885_v50  ;;  %v546_v56 = vcombine.high %v2961_v32, %v2961_v32 }
 0x165   :  { %v356_v17 = vcombine.high %v348_v47, %v348_v47  ;;  %v3080_v49 = vrot.slane %v348_v47, %v2887_v52  ;;  %v338_v2 = vrot.slane %v2498_v16, %v2885_v50  ;;  %v1645_v47 = vrot.slane %v1631_v41, %v2887_v52 }
 0x166   :  { %v357_v18 = vcombine.high %v355_v26, %v355_v26  ;;  %v3087_v57 = vrot.slane %v355_v26, %v2887_v52  ;;  %v1630_v9 = vcombine.low %v3010_v19, %v1615_v46  ;;  %v585_v22 = vsel %vm2926_vm1, %v578_v43, %v583_v38 }
 0x167   :  { %v3084_v4 = vrot.slane %v356_v17, %v2887_v52  ;;  %v591_v26 = vshll.u32 %v2958_v31, 16  ;;  %v339_v46 = vcombine.high %v331_v58, %v331_v58  ;;  %v340_v16 = vcombine.high %v338_v2, %v338_v2 }
 0x168   :  { %v3100_v17 = vrot.slane %v357_v18, %v2887_v52  ;;  %v3111_v19 = vcombine.high %v3087_v57, %v3087_v57  ;;  %v3119_v38 = vrot.slane %v331_v58, %v2887_v52  ;;  %v3125_v21 = vrot.slane %v338_v2, %v2887_v52 }
 0x169   :  { %v3097_v11 = vcombine.high %v3084_v4, %v3084_v4  ;;  %v3122_v43 = vrot.slane %v339_v46, %v2887_v52  ;;  %v3128_v41 = vrot.slane %v340_v16, %v2887_v52  ;;  %v1638_v63 = vrot.slane %v1630_v9, %v2887_v52 }
 0x16a   :  { %3660 = vst [vmem:[#allocation7_spill] sm:$0xff] %v3125_v21  ;;  %v594_v27 = vshrl.u32 %v2958_v31, 16  ;;  %v3136_v58 = vcombine.high %v3119_v38, %v3119_v38  ;;  %v3140_v46 = vcombine.high %v3125_v21, %v3125_v21  ;;  %v593_v2 = vsel %vm2926_vm1, %v586_v39, %v591_v26 }
 0x16b   :  { %v599_v16 = vshll.u32 %v2961_v32, 16  ;;  %v3149_v9 = vcombine.high %v3128_v41, %v3128_v41  ;;  %v816_v36 = vshrl.u32 %v3125_v21, 16  ;;  %v1646_v14 = vcombine.low %v1638_v63, %v1645_v47 }
 0x16c   :  { %v821_v24 = vshll.u32 %v3140_v46, 16  ;;  %v602_v23 = vshrl.u32 %v2961_v32, 16  ;;  %v607_v15 = vshll.u32 %v546_v56, 16  ;;  %v618_v39 = vsel %vm2926_vm1, %v611_v44, %v616_v54 }
 0x16d   :  { %v601_v31 = vsel %vm2926_vm1, %v594_v27, %v599_v16  ;;  %2690 = vmatmul.mubr.msk.bf16.vlgmr.msra.gmra.mxu0 %vm1159_vm3, %v1646_v14  ;;  %v3661_v63 = vshll.u32 %v2896_v0, 16  ;;  %v3662_v47 = vshrl.u32 %v2965_v34, 16  ;;  %v632_v27 = vshll.u32 %v2907_v5, 16 }
 0x16e   :  { %v3164_v18 = vsel %vm2926_vm1, %v816_v36, %v821_v24  ;;  %v902_v32 = vcombine.low %v2981_v48, %v585_v22  ;;  %v903_v56 = vcombine.low %v593_v2, %v601_v31  ;;  %v609_v28 = vsel %vm2926_vm1, %v602_v23, %v607_v15 }
 0x16f   :  { %v626_v36 = vsel %vm2926_vm1, %v3662_v47, %v3661_v63  ;;  %v3663_v16 = vmov 0.0   ;;  %v547_v14 = vcombine.high %v2910_v6, %v2910_v6  ;;  %v1648_v34 = vcombine.low %v2914_v7, %v2917_v8 }
 0x170   :  { %2693 = vmatprep.mubr.msk.bf16.mxu0 %vm2773_vm2, %v3663_v16  ;;  %v1649_v44 = vcombine.low %v2924_v12, %v3042_v30  ;;  %v3664_v54 = vshrl.u32 %v2896_v0, 16  ;;  %v904_v22 = vcombine.low %v609_v28, %v618_v39  ;;  %v912_v15 = vrot.slane %v902_v32, %v2887_v52 }
 0x171   :  { %v919_v23 = vrot.slane %v903_v56, %v2887_v52  ;;  %v648_v31 = vshll.u32 %v547_v14, 16  ;;  %v1647_v24 = vcombine.low %v2910_v6, %v547_v14  ;;  %v2563_v63 = vcombine.high %v3042_v30, %v3046_v59 }
 0x172   :  { %v634_v48 = vsel %vm2926_vm1, %v3664_v54, %v632_v27  ;;  %v926_v47 = vrot.slane %v904_v22, %v2887_v52  ;;  %v1664_v0 = vrot.slane %v1648_v34, %v2887_v52  ;;  %v1671_v26 = vrot.slane %v1649_v44, %v2887_v52 }
 0x173   :  { %v905_v2 = vcombine.low %v626_v36, %v634_v48  ;;  %v934_v10 = vcombine.low %v912_v15, %v919_v23  ;;  %v1657_v27 = vrot.slane %v1647_v24, %v2887_v52  ;;  %v1678_v32 = vrot.slane %v2563_v63, %v2887_v52 }
 0x174   :  { %v548_v36 = vcombine.high %v3042_v30, %v3042_v30  ;;  %v635_v28 = vshrl.u32 %v2907_v5, 16  ;;  %v3665_v14 = vshrl.u32 %v2910_v6, 16  ;;  %v3666_v44 = vshll.u32 %v2917_v8, 16 }
 0x175   :  { %v933_v39 = vrot.slane %v905_v2, %v2887_v52  ;;  %v942_v56 = vrot.slane %v934_v10, %v2887_v52  ;;  %v3667_v54 = vshrl.u32 %v2914_v7, 16  ;;  %v1679_v15 = vcombine.low %v1657_v27, %v1664_v0 }
 0x176   :  { %v650_v34 = vsel %vm2926_vm1, %v3665_v14, %v648_v31  ;;  %v1680_v23 = vcombine.low %v1671_v26, %v1678_v32  ;;  %v673_v2 = vshll.u32 %v2924_v12, 16  ;;  %v3668_v10 = vshll.u32 %v2910_v6, 16 }
 0x177   :  { %v667_v48 = vsel %vm2926_vm1, %v3667_v54, %v3666_v44  ;;  %v935_v22 = vcombine.low %v926_v47, %v933_v39  ;;  %v676_v63 = vshrl.u32 %v2924_v12, 16  ;;  %v681_v31 = vshll.u32 %v3042_v30, 16  ;;  %v2730_v39 = vld [vmem:[%s3645_s2 + $0x8] sm:$0xff]  }
 0x178   :  { %v642_v24 = vsel %vm2926_vm1, %v635_v28, %v3668_v10  ;;  %v684_v14 = vshrl.u32 %v3042_v30, 16  ;;  %v1687_v44 = vrot.slane %v1679_v15, %v2887_v52  ;;  %v1694_v47 = vrot.slane %v1680_v23, %v2887_v52 }
 0x179   :  { %v949_v50 = vrot.slane %v935_v22, %v2887_v52  ;;  %v3669_v26 = vshrl.u32 %v2917_v8, 16  ;;  %v683_v27 = vsel %vm2926_vm1, %v676_v63, %v681_v31  ;;  %v689_v32 = vshll.u32 %v548_v36, 16 }
 0x17a   :  { %v3670_v28 = vshll.u32 %v3061_v40, 16  ;;  %v3671_v54 = vshrl.u32 %v3046_v59, 16  ;;  %v951_v15 = vcombine.low %v642_v24, %v650_v34  ;;  %v1695_v10 = vcombine.low %v1687_v44, %v1694_v47 }
 0x17b   :  { %v675_v0 = vsel %vm2926_vm1, %v3669_v26, %v673_v2  ;;  %v950_v23 = vcombine.low %v942_v56, %v949_v50  ;;  %v952_v2 = vcombine.low %v2945_v25, %v667_v48  ;;  %v691_v21 = vsel %vm2926_vm1, %v684_v14, %v689_v32 }
 0x17c   :  { %v700_v22 = vsel %vm2926_vm1, %v3671_v54, %v3670_v28  ;;  %v953_v26 = vcombine.low %v675_v0, %v683_v27  ;;  %v961_v3 = vrot.slane %v951_v15, %v2887_v52  ;;  %v549_v36 = vcombine.high %v3064_v37, %v3064_v37  ;;  %2694 = vmatmul.mubr.msk.bf16.gmra.mxu0 %vm1159_vm3, %v1695_v10 }
 0x17d   :  { %v1696_v63 = vcombine.low %v3049_v60, %v3068_v45  ;;  %2642 = vmatmul.mubr.msk.bf16.vlgmr.msra.gmra.mxu1 %vm1159_vm3, %v950_v23  ;;  %v954_v50 = vcombine.low %v691_v21, %v700_v22  ;;  %v968_v56 = vrot.slane %v952_v2, %v2887_v52  ;;  %v714_v34 = vshll.u32 %v3068_v45, 16  ;;  %v2731_v21 = vld [vmem:[%s3645_s2] sm:$0xff]   ;;  %2697 = vmatprep.mubr.msk.bf16.mxu0 %vm2773_vm2, %v3663_v16 }
 0x17e   :  { %v975_v25 = vrot.slane %v953_v26, %v2887_v52  ;;  %2662 = vmatpush3.bf16.msra.mxu1 %v2730_v39  ;;  %2645 = vmatprep.mubr.msk.bf16.mxu1 %vm2773_vm2, %v3663_v16  ;;  %v730_v48 = vshll.u32 %v549_v36, 16  ;;  %v1697_v24 = vcombine.low %v3064_v37, %v549_v36  ;;  %v1698_v31 = vcombine.low %v3014_v20, %v3017_v29 }
 0x17f   :  { %v1699_v14 = vcombine.low %v3034_v51, %v3028_v42  ;;  %v982_v44 = vrot.slane %v954_v50, %v2887_v52  ;;  %v983_v47 = vcombine.low %v961_v3, %v968_v56  ;;  %v1706_v0 = vrot.slane %v1696_v63, %v2887_v52  ;;  %2663 = vmatprep.subr.bf16.mxu1 %v3663_v16 }
 0x180   :  { %v3672_v39 = vshll.u32 %v3049_v60, 16  ;;  %v3673_v27 = vshrl.u32 %v3061_v40, 16  ;;  %v1713_v28 = vrot.slane %v1697_v24, %v2887_v52  ;;  %v1720_v54 = vrot.slane %v1698_v31, %v2887_v52 }
 0x181   :  { %v1727_v22 = vrot.slane %v1699_v14, %v2887_v52  ;;  %v3674_v3 = vshrl.u32 %v3049_v60, 16  ;;  %v984_v23 = vcombine.low %v975_v25, %v982_v44  ;;  %v991_v10 = vrot.slane %v983_v47, %v2887_v52 }
 0x182   :  { %v708_v32 = vsel %vm2926_vm1, %v3673_v27, %v3672_v39  ;;  %v717_v2 = vshrl.u32 %v3068_v45, 16  ;;  %v3675_v26 = vshrl.u32 %v3064_v37, 16  ;;  %v1728_v63 = vcombine.low %v1706_v0, %v1713_v28  ;;  %2664 = vmatpush3.bf16.msra.mxu1 %v2731_v21 }
 0x183   :  { %v716_v15 = vsel %vm2926_vm1, %v3674_v3, %v714_v34  ;;  %v1729_v50 = vcombine.low %v1720_v54, %v1727_v22  ;;  %v3676_v56 = vshll.u32 %v3017_v29, 16  ;;  %v3677_v24 = vshrl.u32 %v3014_v20, 16 }
 0x184   :  { %v732_v36 = vsel %vm2926_vm1, %v3675_v26, %v730_v48  ;;  %v755_v25 = vshll.u32 %v3034_v51, 16  ;;  %v998_v31 = vrot.slane %v984_v23, %v2887_v52  ;;  %v3678_v14 = vshll.u32 %v3064_v37, 16 }
 0x185   :  { %v749_v34 = vsel %vm2926_vm1, %v3677_v24, %v3676_v56  ;;  %v758_v48 = vshrl.u32 %v3034_v51, 16  ;;  %v763_v47 = vshll.u32 %v3028_v42, 16  ;;  %v1736_v0 = vrot.slane %v1728_v63, %v2887_v52 }
 0x186   :  { %v724_v44 = vsel %vm2926_vm1, %v717_v2, %v3678_v14  ;;  %v1743_v39 = vrot.slane %v1729_v50, %v2887_v52  ;;  %v3679_v27 = vshrl.u32 %v3017_v29, 16  ;;  %v1000_v28 = vcombine.low %v708_v32, %v716_v15 }
 0x187   :  { %v999_v54 = vcombine.low %v991_v10, %v998_v31  ;;  %v765_v22 = vsel %vm2926_vm1, %v758_v48, %v763_v47  ;;  %v1001_v3 = vcombine.low %v724_v44, %v732_v36  ;;  %v1002_v23 = vcombine.low %v3053_v61, %v749_v34 }
 0x188   :  { %v757_v21 = vsel %vm2926_vm1, %v3679_v27, %v755_v25  ;;  %v1744_v2 = vcombine.low %v1736_v0, %v1743_v39  ;;  %v1010_v56 = vrot.slane %v1000_v28, %v2887_v52  ;;  %v551_v63 = vcombine.high %v3122_v43, %v3122_v43 }
 0x189   :  { %v1003_v26 = vcombine.low %v757_v21, %v765_v22  ;;  %2646 = vmatmul.mubr.msk.bf16.gmra.mxu1 %vm1159_vm3, %v999_v54  ;;  %v1017_v50 = vrot.slane %v1001_v3, %v2887_v52  ;;  %v1024_v32 = vrot.slane %v1002_v23, %v2887_v52  ;;  %v2564_v15 = vcombine.high %v3028_v42, %v3023_v35 }
 0x18a   :  { %v1746_v10 = vcombine.low %v3119_v38, %v3136_v58  ;;  %2698 = vmatmul.mubr.msk.bf16.gmra.mxu0 %vm1159_vm3, %v1744_v2  ;;  %2649 = vmatprep.mubr.msk.bf16.mxu1 %vm2773_vm2, %v3663_v16  ;;  %v812_v36 = vshll.u32 %v551_v63, 16  ;;  %v1747_v24 = vcombine.low %v3122_v43, %v551_v63  ;;  %v1748_v34 = vcombine.low %v3140_v46, %v3128_v41 }
 0x18b   :  { %v1031_v61 = vrot.slane %v1003_v26, %v2887_v52  ;;  %v1032_v25 = vcombine.low %v1010_v56, %v1017_v50  ;;  %2701 = vmatprep.mubr.msk.bf16.mxu0 %vm2773_vm2, %v3663_v16  ;;  %v1755_v31 = vrot.slane %v2564_v15, %v2887_v52  ;;  %v550_v44 = vcombine.high %v3028_v42, %v3028_v42 }
 0x18c   :  { %v1762_v14 = vrot.slane %v1746_v10, %v2887_v52  ;;  %v1769_v47 = vrot.slane %v1747_v24, %v2887_v52  ;;  %v1776_v0 = vrot.slane %v1748_v34, %v2887_v52  ;;  %v766_v39 = vshrl.u32 %v3028_v42, 16 }
 0x18d   :  { %v1033_v48 = vcombine.low %v1024_v32, %v1031_v61  ;;  %v1040_v27 = vrot.slane %v1032_v25, %v2887_v52  ;;  %v771_v28 = vshll.u32 %v550_v44, 16  ;;  %v3680_v54 = vshll.u32 %v3038_v53, 16 }
 0x18e   :  { %v1777_v21 = vcombine.low %v1755_v31, %v1762_v14  ;;  %v3681_v22 = vshrl.u32 %v3023_v35, 16  ;;  %v1778_v2 = vcombine.low %v1769_v47, %v1776_v0  ;;  %v3682_v26 = vshll.u32 %v3119_v38, 16 }
 0x18f   :  { %v1047_v23 = vrot.slane %v1033_v48, %v2887_v52  ;;  %v3683_v56 = vshrl.u32 %v3038_v53, 16  ;;  %v796_v50 = vshll.u32 %v3136_v58, 16  ;;  %v773_v15 = vsel %vm2926_vm1, %v766_v39, %v771_v28 }
 0x190   :  { %v782_v3 = vsel %vm2926_vm1, %v3681_v22, %v3680_v54  ;;  %v1785_v32 = vrot.slane %v1777_v21, %v2887_v52  ;;  %v799_v10 = vshrl.u32 %v3136_v58, 16  ;;  %v3684_v61 = vshrl.u32 %v3122_v43, 16 }
 0x191   :  { %v790_v63 = vsel %vm2926_vm1, %v3683_v56, %v3682_v26  ;;  %v1048_v34 = vcombine.low %v1040_v27, %v1047_v23  ;;  %v1792_v25 = vrot.slane %v1778_v2, %v2887_v52  ;;  %v3685_v31 = vshrl.u32 %v3119_v38, 16 }
 0x192   :  { %v814_v24 = vsel %vm2926_vm1, %v3684_v61, %v812_v36  ;;  %v3686_v44 = vshll.u32 %v3128_v41, 16  ;;  %v3687_v48 = vshrl.u32 %v3140_v46, 16  ;;  %v3688_v0 = vshll.u32 %v3122_v43, 16 }
 0x193   :  { %v798_v14 = vsel %vm2926_vm1, %v3685_v31, %v796_v50  ;;  %v1049_v39 = vcombine.low %v773_v15, %v782_v3  ;;  %2650 = vmatmul.mubr.msk.bf16.gmra.mxu1 %vm1159_vm3, %v1048_v34  ;;  %v1793_v28 = vcombine.low %v1785_v32, %v1792_v25  ;;  %v553_v22 = vcombine.high %v3100_v17, %v3100_v17 }
 0x194   :  { %v831_v47 = vsel %vm2926_vm1, %v3687_v48, %v3686_v44  ;;  %v806_v36 = vsel %vm2926_vm1, %v799_v10, %v3688_v0  ;;  %v1050_v27 = vcombine.low %v790_v63, %v798_v14  ;;  %v1794_v23 = vcombine.low %v3149_v9, %v3080_v49  ;;  %2653 = vmatprep.mubr.msk.bf16.mxu1 %vm2773_vm2, %v3663_v16 }
 0x195   :  { %v1052_v21 = vcombine.low %v3164_v18, %v831_v47  ;;  %v1051_v54 = vcombine.low %v806_v36, %v814_v24  ;;  %v1059_v2 = vrot.slane %v1049_v39, %v2887_v52  ;;  %v2565_v18 = vcombine.high %v3080_v49, %v3084_v4  ;;  %2702 = vmatmul.mubr.msk.bf16.gmra.mxu0 %vm1159_vm3, %v1793_v28 }
 0x196   :  { %v1066_v3 = vrot.slane %v1050_v27, %v2887_v52  ;;  %v894_v63 = vshll.u32 %v553_v22, 16  ;;  %v1796_v50 = vcombine.low %v3087_v57, %v3111_v19  ;;  %v1797_v32 = vcombine.low %v3100_v17, %v553_v22  ;;  %2705 = vmatprep.mubr.msk.bf16.mxu0 %vm2773_vm2, %v3663_v16 }
 0x197   :  { %v1080_v26 = vrot.slane %v1052_v21, %v2887_v52  ;;  %v1073_v56 = vrot.slane %v1051_v54, %v2887_v52  ;;  %v1804_v10 = vrot.slane %v1794_v23, %v2887_v52  ;;  %v1811_v61 = vrot.slane %v2565_v18, %v2887_v52 }
 0x198   :  { %v1081_v15 = vcombine.low %v1059_v2, %v1066_v3  ;;  %v552_v24 = vcombine.high %v3080_v49, %v3080_v49  ;;  %v1818_v25 = vrot.slane %v1796_v50, %v2887_v52  ;;  %v1825_v31 = vrot.slane %v1797_v32, %v2887_v52 }
 0x199   :  { %v1082_v34 = vcombine.low %v1073_v56, %v1080_v26  ;;  %v837_v14 = vshll.u32 %v3149_v9, 16  ;;  %v1826_v48 = vcombine.low %v1804_v10, %v1811_v61  ;;  %v840_v47 = vshrl.u32 %v3149_v9, 16 }
 0x19a   :  { %v1089_v44 = vrot.slane %v1081_v15, %v2887_v52  ;;  %v845_v0 = vshll.u32 %v3080_v49, 16  ;;  %v1827_v39 = vcombine.low %v1818_v25, %v1825_v31  ;;  %v3689_v27 = vshrl.u32 %v3128_v41, 16 }
 0x19b   :  { %v1096_v36 = vrot.slane %v1082_v34, %v2887_v52  ;;  %v848_v28 = vshrl.u32 %v3080_v49, 16  ;;  %v1834_v54 = vrot.slane %v1826_v48, %v2887_v52  ;;  %v853_v23 = vshll.u32 %v552_v24, 16 }
 0x19c   :  { %v839_v21 = vsel %vm2926_vm1, %v3689_v27, %v837_v14  ;;  %v847_v22 = vsel %vm2926_vm1, %v840_v47, %v845_v0  ;;  %v3690_v2 = vshll.u32 %v3097_v11, 16  ;;  %v3691_v3 = vshrl.u32 %v3084_v4, 16 }
 0x19d   :  { %v1097_v18 = vcombine.low %v1089_v44, %v1096_v36  ;;  %v1841_v56 = vrot.slane %v1827_v39, %v2887_v52  ;;  %v3692_v50 = vshll.u32 %v3087_v57, 16  ;;  %v3693_v32 = vshrl.u32 %v3097_v11, 16 }
 0x19e   :  { %v864_v26 = vsel %vm2926_vm1, %v3691_v3, %v3690_v2  ;;  %v878_v10 = vshll.u32 %v3111_v19, 16  ;;  %v855_v61 = vsel %vm2926_vm1, %v848_v28, %v853_v23  ;;  %v881_v24 = vshrl.u32 %v3111_v19, 16 }
 0x19f   :  { %v872_v15 = vsel %vm2926_vm1, %v3693_v32, %v3692_v50  ;;  %v3694_v34 = vshrl.u32 %v3100_v17, 16  ;;  %v1098_v31 = vcombine.low %v839_v21, %v847_v22  ;;  %2654 = vmatmul.mubr.msk.bf16.gmra.mxu1 %vm1159_vm3, %v1097_v18  ;;  %v1842_v14 = vcombine.low %v1834_v54, %v1841_v56 }
 0x1a0   :  { %v3695_v44 = vshrl.u32 %v3087_v57, 16  ;;  %v1099_v47 = vcombine.low %v855_v61, %v864_v26  ;;  %v3696_v0 = vcombine.low %v2997_v62, %v2989_v55  ;;  %2657 = vmatprep.mubr.msk.bf16.mxu1 %vm2773_vm2, %v3663_v16  ;;  %v1300_v18 = vcombine.low %v3042_v30, %v3046_v59 }
 0x1a1   :  { %v896_v25 = vsel %vm2926_vm1, %v3694_v34, %v894_v63  ;;  %v3697_v63 = vshll.u32 %v3100_v17, 16  ;;  %v1108_v21 = vrot.slane %v1098_v31, %v2887_v52  ;;  %2706 = vmatmul.mubr.msk.bf16.gmra.mxu0 %vm1159_vm3, %v1842_v14  ;;  %v1298_v56 = vcombine.low %v2899_v1, %v2914_v7 }
 0x1a2   :  { %v880_v48 = vsel %vm2926_vm1, %v3695_v44, %v878_v10  ;;  %v1295_v36 = vrot.slane %v3696_v0, %v2887_v52  ;;  %v1115_v54 = vrot.slane %v1099_v47, %v2887_v52  ;;  %v1299_v50 = vcombine.low %v2917_v8, %v2924_v12  ;;  %v3698_v12 = vld [vmem:[#allocation6_spill] sm:$0xff] }
 0x1a3   :  { %v888_v39 = vsel %vm2926_vm1, %v881_v24, %v3697_v63  ;;  %v1100_v27 = vcombine.low %v872_v15, %v880_v48  ;;  %v1328_v32 = vrot.slane %v1300_v18, %v2887_v52  ;;  %v1314_v15 = vrot.slane %v1298_v56, %v2887_v52 }
 0x1a4   :  { %v1101_v28 = vcombine.low %v888_v39, %v896_v25  ;;  %v1296_v22 = vcombine.low %v3020_v33, %v1295_v36  ;;  %v1130_v23 = vcombine.low %v1108_v21, %v1115_v54  ;;  %v1297_v33 = vcombine.low %v2907_v5, %v2910_v6 }
 0x1a5   :  { %v1122_v55 = vrot.slane %v1100_v27, %v2887_v52  ;;  %v1321_v59 = vrot.slane %v1299_v50, %v2887_v52  ;;  %v1346_v7 = vcombine.low %v3061_v40, %v3049_v60  ;;  %v1347_v6 = vcombine.low %v3068_v45, %v3064_v37 }
 0x1a6   :  { %v1129_v62 = vrot.slane %v1101_v28, %v2887_v52  ;;  %v1138_v3 = vrot.slane %v1130_v23, %v2887_v52  ;;  %v1307_v30 = vrot.slane %v1297_v33, %v2887_v52  ;;  %v1349_v8 = vcombine.low %v3017_v29, %v3034_v51  ;;  %v3699_v29 = vld [vmem:[#allocation7_spill] sm:$0xff] }
 0x1a7   :  { %v1330_v1 = vcombine.low %v1321_v59, %v1328_v32  ;;  %v1348_v10 = vcombine.low %v3698_v12, %v3014_v20  ;;  %v1356_v24 = vrot.slane %v1346_v7, %v2887_v52  ;;  %v1363_v40 = vrot.slane %v1347_v6, %v2887_v52 }
 0x1a8   :  { %v1131_v2 = vcombine.low %v1122_v55, %v1129_v62  ;;  %v1329_v5 = vcombine.low %v1307_v30, %v1314_v15  ;;  %v1377_v34 = vrot.slane %v1349_v8, %v2887_v52  ;;  %v1398_v51 = vcombine.low %v3699_v29, %v3140_v46 }
 0x1a9   :  { %v1344_v61 = vrot.slane %v1330_v1, %v2887_v52  ;;  %v1370_v37 = vrot.slane %v1348_v10, %v2887_v52  ;;  %v1378_v20 = vcombine.low %v1356_v24, %v1363_v40  ;;  %v1397_v25 = vcombine.low %v3136_v58, %v3122_v43 }
 0x1aa   :  { %v1145_v13 = vrot.slane %v1131_v2, %v2887_v52  ;;  %v1337_v60 = vrot.slane %v1329_v5, %v2887_v52  ;;  %v1396_v14 = vcombine.low %v3038_v53, %v3119_v38  ;;  %v1426_v44 = vrot.slane %v1398_v51, %v2887_v52 }
 0x1ab   :  { %v1379_v31 = vcombine.low %v1370_v37, %v1377_v34  ;;  %v1386_v48 = vrot.slane %v1378_v20, %v2887_v52  ;;  %v1395_v46 = vcombine.low %v3028_v42, %v3023_v35  ;;  %v1419_v47 = vrot.slane %v1397_v25, %v2887_v52 }
 0x1ac   :  { %v1146_v26 = vcombine.low %v1138_v3, %v1145_v13  ;;  %v1345_v45 = vcombine.low %v1337_v60, %v1344_v61  ;;  %v1412_v58 = vrot.slane %v1396_v14, %v2887_v52  ;;  %v1444_v38 = vcombine.low %v3128_v41, %v3149_v9 }
 0x1ad   :  { %v1393_v43 = vrot.slane %v1379_v31, %v2887_v52  ;;  %v1405_v36 = vrot.slane %v1395_v46, %v2887_v52  ;;  %v1428_v53 = vcombine.low %v1419_v47, %v1426_v44  ;;  %v1445_v39 = vcombine.low %v3080_v49, %v3084_v4 }
 0x1ae   :  { %2658 = vmatmul.mubr.msk.bf16.gmra.mxu1 %vm1159_vm3, %v1146_v26  ;;  %v1446_v35 = vcombine.low %v3097_v11, %v3087_v57  ;;  %v1447_v27 = vcombine.low %v3111_v19, %v3100_v17  ;;  %v1454_v21 = vrot.slane %v1444_v38, %v2887_v52 }
 0x1af   :  { %2665 = vmatprep.mubr.msk.bf16.mxu1 %vm2773_vm2, %v3663_v16  ;;  %v1394_v0 = vcombine.low %v1386_v48, %v1393_v43  ;;  %v1427_v63 = vcombine.low %v1405_v36, %v1412_v58  ;;  %v1442_v42 = vrot.slane %v1428_v53, %v2887_v52  ;;  %v1461_v9 = vrot.slane %v1445_v39, %v2887_v52  ;;  %v3700_v53 = vld [vmem:[#allocation5_spill] sm:$0xff] }
 0x1b0   :  { %v1468_v28 = vrot.slane %v1446_v35, %v2887_v52  ;;  %v1475_v49 = vrot.slane %v1447_v27, %v2887_v52 }
 0x1b1   :  { %v1435_v41 = vrot.slane %v1427_v63, %v2887_v52  ;;  %v1476_v57 = vcombine.low %v1454_v21, %v1461_v9 }
 0x1b2   :  { %v1477_v11 = vcombine.low %v1468_v28, %v1475_v49 }
 0x1b3   :  { %v1443_v4 = vcombine.low %v1435_v41, %v1442_v42  ;;  %v1484_v17 = vrot.slane %v1476_v57, %v2887_v52 }
 0x1b4   :  { %v1491_v19 = vrot.slane %v1477_v11, %v2887_v52 }
 0x1b6   :  { %2666 = vmatmul.mubr.msk.bf16.vlgmr.msra.gmra.mxu1 %vm1159_vm3, %v1296_v22  ;;  %v1492_v54 = vcombine.low %v1484_v17, %v1491_v19 }
 0x1b7   :  { %2669 = vmatprep.mubr.msk.bf16.mxu1 %vm2773_vm2, %v3663_v16 }
 0x1be   :  { %2670 = vmatmul.mubr.msk.bf16.gmra.mxu1 %vm1159_vm3, %v1345_v45 }
 0x1bf   :  { %2673 = vmatprep.mubr.msk.bf16.mxu1 %vm2773_vm2, %v3663_v16 }
 0x1c6   :  { %2674 = vmatmul.mubr.msk.bf16.gmra.mxu1 %vm1159_vm3, %v1394_v0 }
 0x1c7   :  { %2677 = vmatprep.mubr.msk.bf16.mxu1 %vm2773_vm2, %v3663_v16 }
 0x1ce   :  { %2678 = vmatmul.mubr.msk.bf16.gmra.mxu1 %vm1159_vm3, %v1443_v4 }
 0x1cf   :  { %2681 = vmatprep.mubr.msk.bf16.mxu1 %vm2773_vm2, %v3663_v16  ;;  %vm2341_vm2 = vcmask 1041408  }
 0x1d6   :  { %2682 = vmatmul.mubr.msk.bf16.gmra.mxu1 %vm1159_vm3, %v1492_v54 }
 0x22d   :  { %v1904_v22 = vpop.f32.mrf.mxu0 }
 0x22f   :  { %v2691_v55 = vpop.f32.mrf.mxu0 }
 0x231   :  { %v1907_v62 = vpop.f32.mrf.mxu0 }
 0x233   :  { %v2692_v23 = vpop.f32.mrf.mxu0 }
 0x23c   :  { %v1912_v3 = vpop.f32.mrf.mxu0 }
 0x23d   :  { %v1209_v2 = vpop.f32.mrf.mxu1 }
 0x23e   :  { %v2695_v26 = vpop.f32.mrf.mxu0 }
 0x23f   :  { %v2643_v13 = vpop.f32.mrf.mxu1 }
 0x240   :  { %v3536_v56 = vpop.f32.mrf.mxu0 }
 0x241   :  { %v1212_v18 = vpop.f32.mrf.mxu1 }
 0x242   :  { %v2696_v16 = vpop.f32.mrf.mxu0 }
 0x243   :  { %v2644_v33 = vpop.f32.mrf.mxu1 }
 0x249   :  { %v1217_v50 = vpop.f32.mrf.mxu1 }
 0x24a   :  { %v3538_v32 = vpop.f32.mrf.mxu0 }
 0x24b   :  { %v2647_v52 = vpop.f32.mrf.mxu1 }
 0x24c   :  { %v2699_v15 = vpop.f32.mrf.mxu0 }
 0x24d   :  { %v1220_v30 = vpop.f32.mrf.mxu1 }
 0x24e   :  { %v3540_v59 = vpop.f32.mrf.mxu0 }
 0x24f   :  { %v2648_v1 = vpop.f32.mrf.mxu1 }
 0x250   :  { %v2700_v7 = vpop.f32.mrf.mxu0 }
 0x253   :  { %v3542_v5 = vpop.f32.mrf.mxu1 }
 0x255   :  { %v2651_v6 = vpop.f32.mrf.mxu1  ;;  %v3544_v8 = vpop.f32.mrf.mxu0 }
 0x257   :  { %v3546_v12 = vpop.f32.mrf.mxu1  ;;  %v2703_v10 = vpop.f32.mrf.mxu0 }
 0x259   :  { %v2652_v61 = vpop.f32.mrf.mxu1  ;;  %v3548_v24 = vpop.f32.mrf.mxu0 }
 0x25b   :  { %v2704_v60 = vpop.f32.mrf.mxu0 }
 0x25f   :  { %v3550_v40 = vpop.f32.mrf.mxu1 }
 0x261   :  { %v2655_v34 = vpop.f32.mrf.mxu1  ;;  %v3552_v37 = vpop.f32.mrf.mxu0 }
 0x263   :  { %v3554_v29 = vpop.f32.mrf.mxu1  ;;  %v2707_v51 = vpop.f32.mrf.mxu0 }
 0x265   :  { %v2656_v45 = vpop.f32.mrf.mxu1  ;;  %v3556_v20 = vpop.f32.mrf.mxu0 }
 0x267   :  { %v2708_v25 = vpop.f32.mrf.mxu0 }
 0x26e   :  { %v3558_v31 = vpop.f32.mrf.mxu1 }
 0x270   :  { %v2659_v14 = vpop.f32.mrf.mxu1 }
 0x272   :  { %v3560_v44 = vpop.f32.mrf.mxu1 }
 0x274   :  { %v2660_v48 = vpop.f32.mrf.mxu1 }
 0x276   :  { %v1554_v46 = vpop.f32.mrf.mxu1 }
 0x277   :  { %v1555_v47 = vadd.f32 %v1554_v46, %v1209_v2 }
 0x278   :  { %v2667_v43 = vpop.f32.mrf.mxu1 }
 0x279   :  { %v1943_v58 = vadd.f32 %v1904_v22, %v1555_v47 }
 0x27a   :  { %v1557_v0 = vpop.f32.mrf.mxu1 }
 0x27b   :  { %v1963_v36 = vcombine.high %v1943_v58, %v1943_v58  ;;  %v1970_v38 = vrot.slane %v1943_v58, %v3700_v53  ;;  %v1558_v63 = vadd.f32 %v1557_v0, %v1212_v18 }
 0x27c   :  { %v2668_v39 = vpop.f32.mrf.mxu1 }
 0x27d   :  { %v1977_v35 = vrot.slane %v1963_v36, %v3700_v53  ;;  %v1978_v42 = vcombine.high %v1970_v38, %v1970_v38  ;;  %v1944_v27 = vadd.f32 %v1907_v62, %v1558_v63 }
 0x27e   :  { %v1562_v21 = vpop.f32.mrf.mxu1 }
 0x27f   :  { %v1979_v41 = vcombine.high %v1977_v35, %v1977_v35  ;;  %v2133_v9 = vcombine.low %v1970_v38, %v1978_v42  ;;  %v1980_v28 = vcombine.high %v1944_v27, %v1944_v27  ;;  %v1987_v4 = vrot.slane %v1944_v27, %v3700_v53 }
 0x280   :  { %v1563_v49 = vadd.f32 %v1562_v21, %v1217_v50  ;;  %v2671_v57 = vpop.f32.mrf.mxu1 }
 0x281   :  { %v2134_v11 = vcombine.low %v1977_v35, %v1979_v41  ;;  %v1994_v17 = vrot.slane %v1980_v28, %v3700_v53  ;;  %v1995_v19 = vcombine.high %v1987_v4, %v1987_v4  ;;  %v2156_v54 = vrot.slane %v1987_v4, %v3700_v53 }
 0x282   :  { %v1945_v22 = vadd.f32 %v1912_v3, %v1563_v49  ;;  %v1565_v55 = vpop.f32.mrf.mxu1  ;;  %v2141_v23 = vrot.slane %v2133_v9, %v3700_v53 }
 0x283   :  { %v2148_v62 = vrot.slane %v2134_v11, %v3700_v53  ;;  %v1996_v2 = vcombine.high %v1994_v17, %v1994_v17  ;;  %v1566_v13 = vadd.f32 %v1565_v55, %v1220_v30  ;;  %v2157_v26 = vcombine.low %v1995_v19, %v1994_v17 }
 0x284   :  { %v1997_v18 = vcombine.high %v1945_v22, %v1945_v22  ;;  %v2004_v33 = vrot.slane %v1945_v22, %v3700_v53  ;;  %v2672_v16 = vpop.f32.mrf.mxu1  ;;  %v2342_v15 = vsel %vm2341_vm2, %v2156_v54, -inf }
 0x285   :  { %v2149_v50 = vcombine.low %v2141_v23, %v2148_v62  ;;  %v1946_v52 = vadd.f32 %v3536_v56, %v1566_v13  ;;  %v2165_v34 = vrot.slane %v2157_v26, %v3700_v53 }
 0x286   :  { %v2011_v1 = vrot.slane %v1997_v18, %v3700_v53  ;;  %v2012_v3 = vcombine.high %v2004_v33, %v2004_v33  ;;  %v2158_v7 = vcombine.low %v1996_v2, %v2004_v33  ;;  %v1570_v6 = vpop.f32.mrf.mxu1 }
 0x287   :  { %v2343_v10 = vmax.f32 %v2149_v50, %v2342_v15  ;;  %v2014_v61 = vcombine.high %v1946_v52, %v1946_v52  ;;  %v2021_v60 = vrot.slane %v1946_v52, %v3700_v53  ;;  %v1571_v30 = vadd.f32 %v1570_v6, %v3542_v5  ;;  %v3595_v52 = vld [vmem:[%s3646_s3] ss:$0 sm:$0xff]  ;;  %s2776_s3 = smov [#allocation2]  }
 0x288   :  { %v2013_v51 = vcombine.high %v2011_v1, %v2011_v1  ;;  %v2172_v45 = vrot.slane %v2158_v7, %v3700_v53  ;;  %v2180_v56 = vrot.slane %v2012_v3, %v3700_v53  ;;  %v2675_v25 = vpop.f32.mrf.mxu1  ;;  %s2466_s14 = sshll.u32 %s2776_s3, 4  ;;  %s2467_s14 = int_to_ptr.vmem [resolvable:$true] %s2466_s14 }
 0x289   :  { %v2344_v14 = vrot.slane %v2343_v10, 4  ;;  %v2028_v48 = vrot.slane %v2014_v61, %v3700_v53  ;;  %v2029_v46 = vcombine.high %v2021_v60, %v2021_v60  ;;  %v1947_v47 = vadd.f32 %v3538_v32, %v1571_v30  ;;  %s2748_s15 = scalar_lea.vmem %s2467_s14, 128  ;;  %p2753_p1 = scmp.lt.s32.totalorder %s2467_s14, %s2467_s14 }
 0x28a   :  { %v2173_v43 = vcombine.low %v2165_v34, %v2172_v45  ;;  %v2181_v58 = vcombine.low %v2011_v1, %v2013_v51  ;;  %v2350_v0 = vsel %vm2341_vm2, %v2180_v56, -inf  ;;  %v1573_v36 = vpop.f32.mrf.mxu1  ;;  %p2749_p0 = scmp.ne.s32.totalorder %s2467_s14, %s2748_s15  ;;  %p2754_p2 = scmp.lt.s32.totalorder %s2748_s15, %s2748_s15 }
 0x28b   :  { %v2345_v5 = vmax.f32 %v2343_v10, %v2344_v14  ;;  %v2182_v38 = vcombine.low %v2021_v60, %v2029_v46  ;;  %v2204_v63 = vrot.slane %v2028_v48, %v3700_v53  ;;  %v2030_v39 = vcombine.high %v2028_v48, %v2028_v48 }
 0x28c   :  { %v2189_v35 = vrot.slane %v2181_v58, %v3700_v53  ;;  %v2351_v42 = vmax.f32 %v2173_v43, %v2350_v0  ;;  %v2031_v27 = vcombine.high %v1947_v47, %v1947_v47  ;;  %v2038_v21 = vrot.slane %v1947_v47, %v3700_v53  ;;  %v2676_v41 = vpop.f32.mrf.mxu1  ;;  %p2755_p3 = por %p2754_p2, %p2753_p1 }
 0x28d   :  { %v2346_v9 = vrot.slane %v2345_v5, 2  ;;  %v2196_v32 = vrot.slane %v2182_v38, %v3700_v53  ;;  %v2358_v28 = vsel %vm2341_vm2, %v2204_v63, -inf  ;;  %v1574_v4 = vadd.f32 %v1573_v36, %v3546_v12 }
 0x28e   :  { %v2352_v49 = vrot.slane %v2351_v42, 4  ;;  %v2045_v57 = vrot.slane %v2031_v27, %v3700_v53  ;;  %v2046_v11 = vcombine.high %v2038_v21, %v2038_v21  ;;  %v2205_v17 = vcombine.low %v2030_v39, %v2038_v21  ;;  %v1578_v19 = vpop.f32.mrf.mxu1  ;;  %p2756_p4 = pnand %p2755_p3, %p2749_p0 }
 0x28f   :  { %v2347_v54 = vmax.f32 %v2345_v5, %v2346_v9  ;;  %v2197_v22 = vcombine.low %v2189_v35, %v2196_v32  ;;  %v1948_v55 = vadd.f32 %v3540_v59, %v1574_v4  ;;  %v1579_v23 = vadd.f32 %v1578_v19, %v3550_v40 }
 0x290   :  { %v2353_v62 = vmax.f32 %v2351_v42, %v2352_v49  ;;  %v2047_v2 = vcombine.high %v2045_v57, %v2045_v57  ;;  %v2206_v13 = vcombine.low %v2046_v11, %v2045_v57  ;;  %v2213_v26 = vrot.slane %v2205_v17, %v3700_v53  ;;  %v2679_v18 = vpop.f32.mrf.mxu1 }
 0x291   :  { %v2348_v33 = vrot.slane %v2347_v54, 1  ;;  %v2359_v12 = vmax.f32 %v2197_v22, %v2358_v28  ;;  %v2048_v16 = vcombine.high %v1948_v55, %v1948_v55  ;;  %v2055_v50 = vrot.slane %v1948_v55, %v3700_v53 }
 0x292   :  { %v2354_v15 = vrot.slane %v2353_v62, 2  ;;  %v2220_v59 = vrot.slane %v2206_v13, %v3700_v53  ;;  %v2228_v40 = vrot.slane %v2047_v2, %v3700_v53  ;;  %v1949_v1 = vadd.f32 %v3544_v8, %v1579_v23  ;;  %v1581_v3 = vpop.f32.mrf.mxu1 }
 0x293   :  { %v2349_v7 = vmax.f32 %v2347_v54, %v2348_v33  ;;  %v2360_v6 = vrot.slane %v2359_v12, 4  ;;  %v2062_v10 = vrot.slane %v2048_v16, %v3700_v53  ;;  %v2063_v61 = vcombine.high %v2055_v50, %v2055_v50 }
 0x294   :  { %v2355_v60 = vmax.f32 %v2353_v62, %v2354_v15  ;;  %v2221_v30 = vcombine.low %v2213_v26, %v2220_v59  ;;  %v2366_v34 = vsel %vm2341_vm2, %v2228_v40, -inf  ;;  %v2065_v51 = vcombine.high %v1949_v1, %v1949_v1  ;;  %v2680_v45 = vpop.f32.mrf.mxu1 }
 0x295   :  { %v2413_v56 = vadd.f32 %v3595_v52, %v2349_v7  ;;  %v2361_v25 = vmax.f32 %v2359_v12, %v2360_v6  ;;  %v2064_v14 = vcombine.high %v2062_v10, %v2062_v10  ;;  %v2229_v48 = vcombine.low %v2055_v50, %v2063_v61 }
 0x296   :  { %v2356_v46 = vrot.slane %v2355_v60, 1  ;;  %v2367_v47 = vmax.f32 %v2221_v30, %v2366_v34  ;;  %v2072_v8 = vrot.slane %v1949_v1, %v3700_v53  ;;  %v2079_v43 = vrot.slane %v2065_v51, %v3700_v53  ;;  %v1586_v58 = vpop.f32.mrf.mxu1 }
 0x297   :  { %2732 = vtanh.f32 %v2413_v56  ;;  %v2362_v0 = vrot.slane %v2361_v25, 2  ;;  %v2230_v36 = vcombine.low %v2062_v10, %v2064_v14  ;;  %v2237_v27 = vrot.slane %v2229_v48, %v3700_v53 }
 0x298   :  { %v2357_v5 = vmax.f32 %v2355_v60, %v2356_v46  ;;  %v2368_v38 = vrot.slane %v2367_v47, 4  ;;  %v2080_v63 = vcombine.high %v2072_v8, %v2072_v8  ;;  %v2252_v39 = vrot.slane %v2072_v8, %v3700_v53  ;;  %v2683_v35 = vpop.f32.mrf.mxu1 }
 0x299   :  { %v2363_v42 = vmax.f32 %v2361_v25, %v2362_v0  ;;  %v2244_v21 = vrot.slane %v2230_v36, %v3700_v53  ;;  %v1582_v41 = vadd.f32 %v1581_v3, %v3554_v29  ;;  %v2081_v4 = vcombine.high %v2079_v43, %v2079_v43 }
 0x29a   :  { %v2414_v9 = vadd.f32 %v3595_v52, %v2357_v5  ;;  %v2369_v32 = vmax.f32 %v2367_v47, %v2368_v38  ;;  %v2253_v28 = vcombine.low %v2080_v63, %v2079_v43  ;;  %v1589_v49 = vpop.f32.mrf.mxu1  ;;  %v1587_v19 = vadd.f32 %v1586_v58, %v3558_v31 }
 0x29b   :  { %v2364_v57 = vrot.slane %v2363_v42, 1  ;;  %v2245_v11 = vcombine.low %v2237_v27, %v2244_v21  ;;  %v1950_v17 = vadd.f32 %v3548_v24, %v1582_v41  ;;  %v2374_v22 = vsel %vm2341_vm2, %v2252_v39, -inf }
 0x29c   :  { %2734 = vtanh.f32 %v2414_v9  ;;  %v2370_v54 = vrot.slane %v2369_v32, 2  ;;  %v1590_v55 = vadd.f32 %v1589_v49, %v3560_v44  ;;  %v2684_v23 = vpop.f32.mrf.mxu1  ;;  %v2261_v18 = vrot.slane %v2253_v28, %v3700_v53 }
 0x29d   :  { %v2365_v29 = vmax.f32 %v2363_v42, %v2364_v57  ;;  %v2375_v62 = vmax.f32 %v2245_v11, %v2374_v22  ;;  %v2082_v2 = vcombine.high %v1950_v17, %v1950_v17  ;;  %v2089_v13 = vrot.slane %v1950_v17, %v3700_v53 }
 0x29e   :  { %v2371_v26 = vmax.f32 %v2369_v32, %v2370_v54  ;;  %v1951_v33 = vadd.f32 %v3552_v37, %v1587_v19  ;;  %v1952_v24 = vadd.f32 %v3556_v20, %v1590_v55 }
 0x29f   :  { %v2415_v31 = vadd.f32 %v3595_v52, %v2365_v29  ;;  %v2376_v12 = vrot.slane %v2375_v62, 4  ;;  %v2096_v16 = vrot.slane %v2082_v2, %v3700_v53  ;;  %v2097_v50 = vcombine.high %v2089_v13, %v2089_v13 }
 0x2a0   :  { %v2372_v44 = vrot.slane %v2371_v26, 1  ;;  %v2254_v15 = vcombine.low %v2081_v4, %v2089_v13  ;;  %v2099_v59 = vcombine.high %v1951_v33, %v1951_v33  ;;  %v2106_v40 = vrot.slane %v1951_v33, %v3700_v53 }
 0x2a1   :  { %2736 = vtanh.f32 %v2415_v31  ;;  %v2377_v1 = vmax.f32 %v2375_v62, %v2376_v12  ;;  %v2098_v3 = vcombine.high %v2096_v16, %v2096_v16  ;;  %v2276_v7 = vrot.slane %v2097_v50, %v3700_v53 }
 0x2a2   :  { %v2373_v6 = vmax.f32 %v2371_v26, %v2372_v44  ;;  %v2268_v37 = vrot.slane %v2254_v15, %v3700_v53  ;;  %v2113_v20 = vrot.slane %v2099_v59, %v3700_v53  ;;  %v2114_v10 = vcombine.high %v2106_v40, %v2106_v40 }
 0x2a3   :  { %v2378_v61 = vrot.slane %v2377_v1, 2  ;;  %v2277_v60 = vcombine.low %v2096_v16, %v2098_v3  ;;  %v2382_v30 = vsel %vm2341_vm2, %v2276_v7, -inf  ;;  %v2116_v34 = vcombine.high %v1952_v24, %v1952_v24 }
 0x2a4   :  { %v2733_v51 = vpop.eup %2732  ;;  %v2269_v45 = vcombine.low %v2261_v18, %v2268_v37  ;;  %v2278_v56 = vcombine.low %v2106_v40, %v2114_v10  ;;  %v2115_v25 = vcombine.high %v2113_v20, %v2113_v20  ;;  %v2300_v48 = vrot.slane %v2113_v20, %v3700_v53 }
 0x2a5   :  { %v2379_v14 = vmax.f32 %v2377_v1, %v2378_v61  ;;  %v2123_v46 = vrot.slane %v1952_v24, %v3700_v53  ;;  %v2130_v47 = vrot.slane %v2116_v34, %v3700_v53  ;;  %v2285_v8 = vrot.slane %v2277_v60, %v3700_v53 }
 0x2a6   :  { %v2383_v43 = vmax.f32 %v2269_v45, %v2382_v30  ;;  %v2292_v58 = vrot.slane %v2278_v56, %v3700_v53  ;;  %v2416_v0 = vadd.f32 %v3595_v52, %v2373_v6  ;;  %v2390_v21 = vsel %vm2341_vm2, %v2300_v48, -inf }
 0x2a7   :  { %v2380_v36 = vrot.slane %v2379_v14, 1  ;;  %v2131_v5 = vcombine.high %v2123_v46, %v2123_v46  ;;  %v2132_v38 = vcombine.high %v2130_v47, %v2130_v47  ;;  %v2301_v63 = vcombine.low %v2115_v25, %v2123_v46 }
 0x2a8   :  { %v2384_v39 = vrot.slane %v2383_v43, 4  ;;  %v2293_v35 = vcombine.low %v2285_v8, %v2292_v58  ;;  %2738 = vtanh.f32 %v2416_v0 }
 0x2a9   :  { %v2735_v42 = vpop.eup %2734  ;;  %v2381_v27 = vmax.f32 %v2379_v14, %v2380_v36  ;;  %v2302_v41 = vcombine.low %v2131_v5, %v2130_v47  ;;  %v2324_v9 = vrot.slane %v2132_v38, %v3700_v53  ;;  %v2309_v49 = vrot.slane %v2301_v63, %v3700_v53 }
 0x2aa   :  { %v2385_v32 = vmax.f32 %v2383_v43, %v2384_v39  ;;  %v2391_v28 = vmax.f32 %v2293_v35, %v2390_v21  ;;  %v2437_v4 = vrot.slane %v2735_v42, 7 }
 0x2ab   :  { %v2316_v57 = vrot.slane %v2302_v41, %v3700_v53  ;;  %v2417_v11 = vadd.f32 %v3595_v52, %v2381_v27  ;;  %v2398_v54 = vsel %vm2341_vm2, %v2324_v9, -inf }
 0x2ac   :  { %v2386_v17 = vrot.slane %v2385_v32, 2  ;;  %v2392_v19 = vrot.slane %v2391_v28, 4  ;;  %v2439_v22 = vsel %vm2438_vm4, %v2437_v4, %v2733_v51 }
 0x2ad   :  { %v2317_v55 = vcombine.low %v2309_v49, %v2316_v57  ;;  %2740 = vtanh.f32 %v2417_v11 }
 0x2ae   :  { %v2737_v23 = vpop.eup %2736  ;;  %v2387_v29 = vmax.f32 %v2385_v32, %v2386_v17  ;;  %v2393_v62 = vmax.f32 %v2391_v28, %v2392_v19 }
 0x2af   :  { %v2399_v2 = vmax.f32 %v2317_v55, %v2398_v54  ;;  %v2440_v13 = vrot.slane %v2737_v23, 6 }
 0x2b0   :  { %v2388_v26 = vrot.slane %v2387_v29, 1  ;;  %v2394_v18 = vrot.slane %v2393_v62, 2 }
 0x2b1   :  { %v2400_v33 = vrot.slane %v2399_v2, 4  ;;  %v2442_v24 = vsel %vm2441_vm5, %v2440_v13, %v2439_v22 }
 0x2b2   :  { %v2395_v53 = vmax.f32 %v2393_v62, %v2394_v18  ;;  %v2389_v31 = vmax.f32 %v2387_v29, %v2388_v26 }
 0x2b3   :  { %v2401_v12 = vmax.f32 %v2399_v2, %v2400_v33 }
 0x2b4   :  { %v2396_v16 = vrot.slane %v2395_v53, 1  ;;  %v2418_v50 = vadd.f32 %v3595_v52, %v2389_v31 }
 0x2b5   :  { %v2739_v44 = vpop.eup %2738  ;;  %v2402_v15 = vrot.slane %v2401_v12, 2 }
 0x2b6   :  { %v2397_v59 = vmax.f32 %v2395_v53, %v2396_v16  ;;  %2742 = vtanh.f32 %v2418_v50  ;;  %v2443_v40 = vrot.slane %v2739_v44, 5 }
 0x2b7   :  { %v2403_v1 = vmax.f32 %v2401_v12, %v2402_v15 }
 0x2b8   :  { %v2419_v3 = vadd.f32 %v3595_v52, %v2397_v59  ;;  %v2445_v7 = vsel %vm2444_vm6, %v2443_v40, %v2442_v24 }
 0x2b9   :  { %v2404_v6 = vrot.slane %v2403_v1, 1 }
 0x2ba   :  { %v2741_v37 = vpop.eup %2740  ;;  %2744 = vtanh.f32 %v2419_v3 }
 0x2bb   :  { %v2405_v20 = vmax.f32 %v2403_v1, %v2404_v6  ;;  %v2446_v10 = vrot.slane %v2741_v37, 4 }
 0x2bd   :  { %v2420_v61 = vadd.f32 %v3595_v52, %v2405_v20  ;;  %v2448_v60 = vsel %vm2447_vm7, %v2446_v10, %v2445_v7 }
 0x2bf   :  { %2746 = vtanh.f32 %v2420_v61 }
 0x2c3   :  { %v2743_v30 = vpop.eup %2742 }
 0x2c4   :  { %v2449_v34 = vrot.slane %v2743_v30, 3 }
 0x2c6   :  { %v2451_v51 = vsel %vm2450_vm8, %v2449_v34, %v2448_v60 }
 0x2c7   :  { %v2745_v45 = vpop.eup %2744 }
 0x2c8   :  { %v2452_v56 = vrot.slane %v2745_v45, 2 }
 0x2ca   :  { %v2454_v25 = vsel %vm2453_vm9, %v2452_v56, %v2451_v51 }
 0x2cc   :  { %v2747_v14 = vpop.eup %2746 }
 0x2cd   :  { %v2455_v48 = vrot.slane %v2747_v14, 1 }
 0x2cf   :  { %v2457_v46 = vsel %vm2456_vm10, %v2455_v48, %v2454_v25 }
 0x2d0   :  { %2459 = vst [vmem:[#allocation2] sm:$0xff] %v2457_v46 }
 0x2d1   :  { %2759 = shalt.err (!%p2756_p4)
}
 0x2d2   :  { %2469 = dma.vmem_to_hbm [thread:$0]  %s2467_s14, 128, %s3647_s4, [#allocation3]  }
 0x2d3   :  { %2768 = dma.done.wait [#allocation3], 128  }
 0x2d4   :  { %2769 = vsyncadd [#allocation3], 4294967168 }
 0x2d5   :  { %2473 = vsyncpa [#allocation3], 1 }

</bundles_post_ra>
